<compile_context>
chip_gen: v7x
topology: tpu7x:2x2x1
jax: 0.10.0
libtpu: 0.0.40
codegen_flags: <defaults>
</compile_context>

<pallas_src>
import functools

import jax
import jax.numpy as jnp
from jax.experimental import pallas as pl
from jax.experimental.pallas import tpu as pltpu


_DEFAULT_K_TILE = 8192   # input-feature tile for the streamed encoder weight


def _round_up(x, m):
    return (x + m - 1) // m * m


def _num_tensorcores():
    """2 on megacore / 2-TC chips (v4 / v5p / v7x); 1 on v5e / v6e / unknown."""
    try:
        kind = (getattr(jax.devices()[0], "device_kind", "") or "").lower()
    except Exception:
        return 1
    if "lite" in kind or "v5e" in kind or "v6e" in kind:
        return 1
    if "v7" in kind or "v4" in kind or "v5p" in kind:
        return 2
    return 1


def prepare_encoder_weight(w_enc, *, n_d=None, k_tile=_DEFAULT_K_TILE):
    """Pad / bf16-cast / repack the encoder weight ONCE (hoisted out of forward).

    Returns (w_packed, meta) where w_packed has shape (n_d, f_in_pad, d // n_d)
    in bf16 so each D block is a contiguous HBM slab.
    """
    f_in, d = w_enc.shape
    if n_d is None:
        n_d = _num_tensorcores()
    if n_d < 1 or d % (128 * n_d) != 0:
        n_d = 1
    td = d // n_d

    f_in_128 = _round_up(f_in, 128)
    tk = min(_round_up(k_tile, 128), f_in_128)
    f_in_pad = _round_up(f_in_128, tk)

    w_bf16 = w_enc.astype(jnp.bfloat16)                       # cast BEFORE padding
    w_pad = jnp.zeros((f_in_pad, d), jnp.bfloat16).at[:f_in, :].set(w_bf16)
    w_packed = jnp.transpose(w_pad.reshape(f_in_pad, n_d, td), (1, 0, 2))
    meta = dict(n_d=n_d, td=td, tk=tk, d=d, f_in=f_in, f_in_pad=f_in_pad,
                n_k=f_in_pad // tk)
    return w_packed, meta


def _proto_kernel(x_ref, w_ref, b_enc_ref, w_lin_ref, b_lin_ref, out_ref, acc_ref,
                  *, batch, q_pad, way, shot, dis_f, finalize):
    """Grid = (D blocks [parallel], K blocks [arbitrary])."""
    k = pl.program_id(1)

    @pl.when(k == 0)
    def _init():
        acc_ref[...] = jnp.zeros_like(acc_ref)

    # bf16 x bf16 -> f32 accumulation on the MXU (HBM-bound weight stream).
    acc_ref[...] += jnp.dot(x_ref[...], w_ref[0],
                            preferred_element_type=jnp.float32)

    @pl.when(k == pl.num_programs(1) - 1)
    def _epilogue():
        # Encoder bias added exactly once (not per K tile).
        feats = acc_ref[...] + b_enc_ref[...]                 # [n_pad, td] f32
        query = feats[:q_pad, :]                              # [q_pad, td]

        # Exact f32 per-class prototypes (support rows start at q_pad).
        protos = []
        for w in range(way):
            lo = q_pad + w * shot
            protos.append(jnp.mean(feats[lo:lo + shot, :], axis=0, keepdims=True))

        # One 2-D [q_pad, td] slab per class (no [q, way, td] 3-D intermediate).
        zs = [(query - p) ** 2 for p in protos]

        if dis_f == "L2":
            cols = [jnp.sum(z, axis=1, keepdims=True) for z in zs]
            dis = jnp.concatenate(cols, axis=1)               # [q_pad, way]
        else:  # 'Sim'
            # NOTE: F.normalize(z, p=2, dim=1) normalises over the *way* axis per
            # (query, feature) pair, i.e. it is local to each feature d, so the
            # decomposition over D blocks remains additive.  Do NOT change this
            # to a normalisation over D without also removing the D split.
            ss = zs[0] * zs[0]
            for z in zs[1:]:
                ss = ss + z * z
            inv_n1 = 1.0 / jnp.maximum(jnp.sqrt(ss), 1e-12)   # [q_pad, td]
            scaled = w_lin_ref[...] * inv_n1                  # [q_pad, td]
            cols = [jnp.sum(z * scaled, axis=1, keepdims=True) for z in zs]
            dis = jnp.concatenate(cols, axis=1)               # [q_pad, way]

        if finalize:
            if dis_f != "L2":
                zl = dis + b_lin_ref[0, 0]                    # nn.Linear bias, once
                n2 = jnp.sqrt(jnp.sum(zl * zl, axis=1, keepdims=True))
                dis = zl / jnp.maximum(n2, 1e-12)             # F.normalize(dim=1)
            # (-dis + 1e-8).log_softmax(dim=1)
            s = -dis + 1e-8
            m = jnp.max(s, axis=1, keepdims=True)
            e = jnp.exp(s - m)
            lse = jnp.log(jnp.sum(e, axis=1, keepdims=True)) + m
            out_ref[...] = (s - lse)[:batch, :].astype(out_ref.dtype)
        else:
            out_ref[...] = dis[None, :, :].astype(out_ref.dtype)


def prototypical_forward(x, w_packed, meta, b_enc, w_lin, b_lin, *, way, shot,
                         dis_f="L2"):
    """x: [N, C, L] with N = way*shot + batch.  Returns log-probs [batch, way]."""
    assert dis_f in ("L2", "Sim")
    n = x.shape[0]
    n_support = way * shot
    batch = n - n_support
    assert batch >= 1, "query set must be non-empty"

    n_d, td, tk = meta["n_d"], meta["td"], meta["tk"]
    d, f_in, f_in_pad, n_k = meta["d"], meta["f_in"], meta["f_in_pad"], meta["n_k"]

    x_flat = x.reshape(n, -1).astype(jnp.float32)
    assert x_flat.shape[1] == f_in, "input width must match the prepared weight"

    # Row layout: queries first (rows 0..batch-1), then support; pad rows to a
    # multiple of 16 (bf16 packs 16 rows per vreg).
    q_pad = _round_up(batch, 16)
    n_pad = q_pad + _round_up(n_support, 16)

    # TODO(synk): x is cast to bf16 to match the bf16 weight stream; keep it f32
    # (it is tiny) if exact fp32-PyTorch parity of the activations is required.
    x_pad = jnp.zeros((n_pad, f_in_pad), jnp.bfloat16)
    x_pad = x_pad.at[:batch, :f_in].set(x_flat[n_support:].astype(jnp.bfloat16))
    x_pad = x_pad.at[q_pad:q_pad + n_support, :f_in].set(
        x_flat[:n_support].astype(jnp.bfloat16))

    b_enc_2d = b_enc.reshape(1, d).astype(jnp.float32)
    w_lin_row = w_lin.reshape(1, d).astype(jnp.float32)
    b_lin_2d = b_lin.reshape(1, 1).astype(jnp.float32)

    finalize = (n_d == 1)
    kernel = functools.partial(_proto_kernel, batch=batch, q_pad=q_pad, way=way,
                               shot=shot, dis_f=dis_f, finalize=finalize)

    if finalize:
        out_shape = jax.ShapeDtypeStruct((batch, way), jnp.float32)
        out_spec = pl.BlockSpec((batch, way), lambda j, k: (0, 0))
    else:
        out_shape = jax.ShapeDtypeStruct((n_d, q_pad, way), jnp.float32)
        out_spec = pl.BlockSpec((1, q_pad, way), lambda j, k: (j, 0, 0))

    # VMEM budget from actual tiles (double-buffered weight + x, f32 accumulator).
    vmem_need = (2 * tk * td * 2) + (2 * n_pad * tk * 2) + (n_pad * td * 4)
    vmem_limit = int(min(max(2 * vmem_need + (16 << 20), 32 << 20), 60 << 20))

    cost = pl.CostEstimate(
        flops=2 * n_pad * f_in_pad * d,
        transcendentals=0,
        bytes_accessed=f_in_pad * d * 2 + n_d * n_pad * f_in_pad * 2
        + batch * way * 4)

    result = pl.pallas_call(
        kernel,
        out_shape=out_shape,
        grid=(n_d, n_k),
        in_specs=[
            pl.BlockSpec((n_pad, tk), lambda j, k: (0, k)),      # x (bf16)
            pl.BlockSpec((1, tk, td), lambda j, k: (j, k, 0)),   # encoder weight (bf16)
            pl.BlockSpec((1, td), lambda j, k: (0, j)),          # encoder bias (f32)
            pl.BlockSpec((1, td), lambda j, k: (0, j)),          # nn.Linear weight row
            pl.BlockSpec(memory_space=pltpu.MemorySpace.SMEM),   # nn.Linear bias scalar
        ],
        out_specs=out_spec,
        scratch_shapes=[pltpu.VMEM((n_pad, td), jnp.float32)],   # f32 feature accumulator
        compiler_params=pltpu.CompilerParams(
            dimension_semantics=("parallel", "arbitrary"),
            vmem_limit_bytes=vmem_limit),
        cost_estimate=cost,
    )(x_pad, w_packed, b_enc_2d, w_lin_row, b_lin_2d)

    if finalize:
        return result

    # n_d == 2 (two TensorCores): the tiny [n_d, q_pad, way] combine is done in
    # plain JAX -- a dedicated pallas_call would be pure launch overhead.
    dis = jnp.sum(result, axis=0)                                # [q_pad, way]
    if dis_f != "L2":
        zl = dis + b_lin.reshape(())
        n2 = jnp.sqrt(jnp.sum(zl * zl, axis=1, keepdims=True))
        dis = zl / jnp.maximum(n2, 1e-12)
    return jax.nn.log_softmax(-dis + 1e-8, axis=1)[:batch]


def _reference_forward(x, w_enc, b_enc, w_lin, b_lin, *, way, shot, dis_f):
    """Pure-JAX reference (same linear encoder stand-in, same bf16-cast inputs)."""
    n = x.shape[0]
    xf = x.reshape(n, -1).astype(jnp.bfloat16).astype(jnp.float32)
    we = w_enc.astype(jnp.bfloat16).astype(jnp.float32)
    feats = jnp.dot(xf, we, precision=jax.lax.Precision.HIGHEST) + b_enc.reshape(1, -1)
    ns = way * shot
    support, query = feats[:ns], feats[ns:]
    prototypes = support.reshape(way, shot, -1).mean(axis=1)
    if dis_f == "L2":
        diff = query[:, None, :] - prototypes[None, :, :]
        dis = jnp.sum(diff * diff, axis=2)
    else:
        z = (query[:, None, :] - prototypes[None, :, :]) ** 2
        nz = jnp.sqrt(jnp.sum(z * z, axis=1, keepdims=True))
        z = z / jnp.maximum(nz, 1e-12)
        zl = jnp.einsum("bwd,d->bw", z, w_lin.reshape(-1)) + b_lin.reshape(())
        nzl = jnp.sqrt(jnp.sum(zl * zl, axis=1, keepdims=True))
        dis = zl / jnp.maximum(nzl, 1e-12)
    return jax.nn.log_softmax(-dis + 1e-8, axis=1)


if __name__ == "__main__":
    key = jax.random.PRNGKey(0)
    way, shot, batch = 3, 2, 4
    C, L = 8, 16            # small stand-in for the [270, 1000] waveforms
    D = 512                 # feature_size of the 'ResNet' / 'SENet' heads
    N = way * shot + batch

    k1, k2, k3, k4, k5 = jax.random.split(key, 5)
    x = jax.random.normal(k1, (N, C, L), dtype=jnp.float32)
    w_enc = jax.random.normal(k2, (C * L, D), dtype=jnp.float32) * 0.05
    b_enc = jax.random.normal(k3, (1, D), dtype=jnp.float32) * 0.01
    w_lin = jax.random.normal(k4, (D, 1), dtype=jnp.float32) * 0.05
    b_lin = jax.random.normal(k5, (1, 1), dtype=jnp.float32) * 0.01

    # Hoisted out of the per-call path: pad / bf16-cast / repack the encoder
    # weight exactly once (on the intended [270k, 512] weight this avoids
    # re-writing hundreds of MB of HBM on every forward call).
    w_packed, meta = prepare_encoder_weight(w_enc)
    w_packed = jax.block_until_ready(w_packed)

    for dis_f in ("L2", "Sim"):
        out = prototypical_forward(x, w_packed, meta, b_enc, w_lin, b_lin,
                                   way=way, shot=shot, dis_f=dis_f)
        out = jax.block_until_ready(out)
        assert out.shape == (batch, way), out.shape
        ref = _reference_forward(x, w_enc, b_enc, w_lin, b_lin,
                                 way=way, shot=shot, dis_f=dis_f)
        err = float(jnp.max(jnp.abs(out - ref)))
        assert err < 5e-2, f"{dis_f}: max abs err {err}"

    print("KERNEL_OK")
</pallas_src>

<mosaic_0001>
module attributes {stable_mosaic.version = 11 : i64} {
  func.func @_proto_kernel(%arg0: i32, %arg1: i32, %arg2: memref<32x128xbf16, #tpu.memory_space<vmem>>, %arg3: memref<1x128x512xbf16, #tpu.memory_space<vmem>>, %arg4: memref<1x512xf32, #tpu.memory_space<vmem>>, %arg5: memref<1x512xf32, #tpu.memory_space<vmem>>, %arg6: memref<1x1xf32, #tpu.memory_space<smem>>, %arg7: memref<4x3xf32, #tpu.memory_space<vmem>>, %arg8: memref<32x512xf32, #tpu.memory_space<vmem>>) attributes {dimension_semantics = [#tpu.dimension_semantics<parallel>, #tpu.dimension_semantics<arbitrary>], iteration_bounds = array<i64: 1, 1>, scalar_prefetch = 0 : i64, scratch_operands = 1 : i64, tpu.core_type = #tpu.core_type<tc>, window_params = [{transform_indices = @transform_0, window_bounds = array<i64: 32, 128>}, {transform_indices = @transform_1, window_bounds = array<i64: 1, 128, 512>}, {transform_indices = @transform_2, window_bounds = array<i64: 1, 512>}, {transform_indices = @transform_3, window_bounds = array<i64: 1, 512>}, {transform_indices = @transform_4, window_bounds = array<i64: 1, 1>}, {pipeline_mode = #tpu.pipeline_mode<synchronous>, transform_indices = @transform_5, window_bounds = array<i64: 4, 3>}]} {
    %c0_i32 = arith.constant 0 : i32
    %0 = arith.cmpi eq, %arg1, %c0_i32 : i32
    %1 = arith.extui %0 : i1 to i32
    %c0_i32_0 = arith.constant 0 : i32
    %2 = arith.cmpi ne, %1, %c0_i32_0 : i32
    scf.if %2 {
      %cst_11 = arith.constant 0.000000e+00 : f32
      %13 = vector.broadcast %cst_11 : f32 to vector<32x512xf32>
      %c0_12 = arith.constant 0 : index
      %c0_13 = arith.constant 0 : index
      %14 = vector.load %arg8[%c0_12, %c0_13] : memref<32x512xf32, #tpu.memory_space<vmem>>, vector<32x512xf32>
      tpu.vector_store %arg8[%c0_12, %c0_13], %13 {strides = array<i32>} : memref<32x512xf32, #tpu.memory_space<vmem>>, vector<32x512xf32>,
    } else {
    }
    %c0 = arith.constant 0 : index
    %c0_1 = arith.constant 0 : index
    %3 = vector.load %arg8[%c0, %c0_1] : memref<32x512xf32, #tpu.memory_space<vmem>>, vector<32x512xf32>
    %c0_2 = arith.constant 0 : index
    %c0_3 = arith.constant 0 : index
    %4 = vector.load %arg2[%c0_2, %c0_3] : memref<32x128xbf16, #tpu.memory_space<vmem>>, vector<32x128xbf16>
    %c0_4 = arith.constant 0 : index
    %c0_5 = arith.constant 0 : index
    %c0_6 = arith.constant 0 : index
    %5 = vector.load %arg3[%c0_4, %c0_5, %c0_6] : memref<1x128x512xbf16, #tpu.memory_space<vmem>>, vector<1x128x512xbf16>
    %6 = vector.shape_cast %5 : vector<1x128x512xbf16> to vector<128x512xbf16>
    %cst = arith.constant dense<0.000000e+00> : vector<32x512xf32>
    %7 = tpu.matmul %4, %6, %cst {dimension_numbers = #tpu.dot_dimension_numbers<[1], [0], [0], [1], [0, 0, 1, 1], [], []>} : vector<32x128xbf16>, vector<128x512xbf16>, vector<32x512xf32> -> vector<32x512xf32>
    %8 = arith.addf %3, %7 : vector<32x512xf32>
    %c0_7 = arith.constant 0 : index
    %c0_8 = arith.constant 0 : index
    %9 = vector.load %arg8[%c0_7, %c0_8] : memref<32x512xf32, #tpu.memory_space<vmem>>, vector<32x512xf32>
    tpu.vector_store %arg8[%c0_7, %c0_8], %8 {strides = array<i32>} : memref<32x512xf32, #tpu.memory_space<vmem>>, vector<32x512xf32>,
    %c0_i32_9 = arith.constant 0 : i32
    %10 = arith.cmpi eq, %arg1, %c0_i32_9 : i32
    %11 = arith.extui %10 : i1 to i32
    %c0_i32_10 = arith.constant 0 : i32
    %12 = arith.cmpi ne, %11, %c0_i32_10 : i32
    scf.if %12 {
      %c0_11 = arith.constant 0 : index
      %c0_12 = arith.constant 0 : index
      %13 = vector.load %arg8[%c0_11, %c0_12] : memref<32x512xf32, #tpu.memory_space<vmem>>, vector<32x512xf32>
      %c0_13 = arith.constant 0 : index
      %c0_14 = arith.constant 0 : index
      %14 = vector.load %arg4[%c0_13, %c0_14] : memref<1x512xf32, #tpu.memory_space<vmem>>, vector<1x512xf32>
      %15 = vector.broadcast %14 : vector<1x512xf32> to vector<32x512xf32>
      %16 = arith.addf %13, %15 : vector<32x512xf32>
      %17 = vector.extract_strided_slice %16 {offsets = [0, 0], sizes = [16, 512], strides = [1, 1]} : vector<32x512xf32> to vector<16x512xf32>
      %18 = vector.extract_strided_slice %16 {offsets = [16, 0], sizes = [2, 512], strides = [1, 1]} : vector<32x512xf32> to vector<2x512xf32>
      %cst_15 = arith.constant dense<0.000000e+00> : vector<512xf32>
      %19 = vector.multi_reduction <add>, %18, %cst_15 [0] : vector<2x512xf32> to vector<512xf32>
      %20 = vector.shape_cast %19 : vector<512xf32> to vector<1x512xf32>
      %cst_16 = arith.constant 2.000000e+00 : f32
      %21 = vector.broadcast %cst_16 : f32 to vector<1x512xf32>
      %22 = arith.divf %20, %21 : vector<1x512xf32>
      %23 = vector.extract_strided_slice %16 {offsets = [18, 0], sizes = [2, 512], strides = [1, 1]} : vector<32x512xf32> to vector<2x512xf32>
      %cst_17 = arith.constant dense<0.000000e+00> : vector<512xf32>
      %24 = vector.multi_reduction <add>, %23, %cst_17 [0] : vector<2x512xf32> to vector<512xf32>
      %25 = vector.shape_cast %24 : vector<512xf32> to vector<1x512xf32>
      %cst_18 = arith.constant 2.000000e+00 : f32
      %26 = vector.broadcast %cst_18 : f32 to vector<1x512xf32>
      %27 = arith.divf %25, %26 : vector<1x512xf32>
      %28 = vector.extract_strided_slice %16 {offsets = [20, 0], sizes = [2, 512], strides = [1, 1]} : vector<32x512xf32> to vector<2x512xf32>
      %cst_19 = arith.constant dense<0.000000e+00> : vector<512xf32>
      %29 = vector.multi_reduction <add>, %28, %cst_19 [0] : vector<2x512xf32> to vector<512xf32>
      %30 = vector.shape_cast %29 : vector<512xf32> to vector<1x512xf32>
      %cst_20 = arith.constant 2.000000e+00 : f32
      %31 = vector.broadcast %cst_20 : f32 to vector<1x512xf32>
      %32 = arith.divf %30, %31 : vector<1x512xf32>
      %33 = vector.broadcast %22 : vector<1x512xf32> to vector<16x512xf32>
      %34 = arith.subf %17, %33 : vector<16x512xf32>
      %35 = arith.mulf %34, %34 : vector<16x512xf32>
      %36 = vector.broadcast %27 : vector<1x512xf32> to vector<16x512xf32>
      %37 = arith.subf %17, %36 : vector<16x512xf32>
      %38 = arith.mulf %37, %37 : vector<16x512xf32>
      %39 = vector.broadcast %32 : vector<1x512xf32> to vector<16x512xf32>
      %40 = arith.subf %17, %39 : vector<16x512xf32>
      %41 = arith.mulf %40, %40 : vector<16x512xf32>
      %cst_21 = arith.constant dense<0.000000e+00> : vector<16xf32>
      %42 = vector.multi_reduction <add>, %35, %cst_21 [1] : vector<16x512xf32> to vector<16xf32>
      %43 = vector.shape_cast %42 : vector<16xf32> to vector<16x1xf32>
      %cst_22 = arith.constant dense<0.000000e+00> : vector<16xf32>
      %44 = vector.multi_reduction <add>, %38, %cst_22 [1] : vector<16x512xf32> to vector<16xf32>
      %45 = vector.shape_cast %44 : vector<16xf32> to vector<16x1xf32>
      %cst_23 = arith.constant dense<0.000000e+00> : vector<16xf32>
      %46 = vector.multi_reduction <add>, %41, %cst_23 [1] : vector<16x512xf32> to vector<16xf32>
      %47 = vector.shape_cast %46 : vector<16xf32> to vector<16x1xf32>
      %48 = tpu.concatenate %43, %45, %47 in 1 : vector<16x1xf32>, vector<16x1xf32>, vector<16x1xf32> -> vector<16x3xf32>
      %cst_24 = arith.constant 0.000000e+00 : f32
      %49 = vector.broadcast %cst_24 : f32 to vector<16x3xf32>
      %50 = arith.subf %49, %48 : vector<16x3xf32>
      %cst_25 = arith.constant 9.99999993E-9 : f32
      %51 = vector.broadcast %cst_25 : f32 to vector<16x3xf32>
      %52 = arith.addf %50, %51 : vector<16x3xf32>
      %cst_26 = arith.constant dense<0xFF800000> : vector<16xf32>
      %53 = vector.multi_reduction <maximumf>, %52, %cst_26 [1] : vector<16x3xf32> to vector<16xf32>
      %54 = vector.shape_cast %53 : vector<16xf32> to vector<16x1xf32>
      %55 = vector.broadcast %54 : vector<16x1xf32> to vector<16x3xf32>
      %56 = arith.subf %52, %55 : vector<16x3xf32>
      %57 = math.exp %56 : vector<16x3xf32>
      %cst_27 = arith.constant dense<0.000000e+00> : vector<16xf32>
      %58 = vector.multi_reduction <add>, %57, %cst_27 [1] : vector<16x3xf32> to vector<16xf32>
      %59 = vector.shape_cast %58 : vector<16xf32> to vector<16x1xf32>
      %60 = math.log %59 : vector<16x1xf32>
      %61 = arith.addf %60, %54 : vector<16x1xf32>
      %62 = vector.broadcast %61 : vector<16x1xf32> to vector<16x3xf32>
      %63 = arith.subf %52, %62 : vector<16x3xf32>
      %64 = vector.extract_strided_slice %63 {offsets = [0, 0], sizes = [4, 3], strides = [1, 1]} : vector<16x3xf32> to vector<4x3xf32>
      %c0_28 = arith.constant 0 : index
      %c0_29 = arith.constant 0 : index
      %65 = vector.load %arg7[%c0_28, %c0_29] : memref<4x3xf32, #tpu.memory_space<vmem>>, vector<4x3xf32>
      tpu.vector_store %arg7[%c0_28, %c0_29], %64 {strides = array<i32>} : memref<4x3xf32, #tpu.memory_space<vmem>>, vector<4x3xf32>,
    } else {
    }
    return
  }
  func.func @transform_0(%arg0: i32, %arg1: i32) -> (i32, i32) {
    %c0_i32 = arith.constant 0 : i32
    %c0_i32_0 = arith.constant 0 : i32
    return %c0_i32, %arg1 : i32, i32
  }
  func.func @transform_1(%arg0: i32, %arg1: i32) -> (i32, i32, i32) {
    %c0_i32 = arith.constant 0 : i32
    %c0_i32_0 = arith.constant 0 : i32
    return %arg0, %arg1, %c0_i32 : i32, i32, i32
  }
  func.func @transform_2(%arg0: i32, %arg1: i32) -> (i32, i32) {
    %c0_i32 = arith.constant 0 : i32
    %c0_i32_0 = arith.constant 0 : i32
    return %c0_i32, %arg0 : i32, i32
  }
  func.func @transform_3(%arg0: i32, %arg1: i32) -> (i32, i32) {
    %c0_i32 = arith.constant 0 : i32
    %c0_i32_0 = arith.constant 0 : i32
    return %c0_i32, %arg0 : i32, i32
  }
  func.func @transform_4(%arg0: i32, %arg1: i32) -> (i32, i32) {
    %c0_i32 = arith.constant 0 : i32
    %c0_i32_0 = arith.constant 0 : i32
    %c0_i32_1 = arith.constant 0 : i32
    return %c0_i32, %c0_i32_0 : i32, i32
  }
  func.func @transform_5(%arg0: i32, %arg1: i32) -> (i32, i32) {
    %c0_i32 = arith.constant 0 : i32
    %c0_i32_0 = arith.constant 0 : i32
    %c0_i32_1 = arith.constant 0 : i32
    return %c0_i32, %c0_i32_0 : i32, i32
  }
}

</mosaic_0001>

<bundles_post_ra>
// kernel: tpu_custom_call.1
= control target key start
LH: loop header
LB: loop body
LE: loop exit
PB: predicated region body
PF: predicated region fallthrough
CT: control target
= control target key end

     0   :  { %11 = vsyncpa [#allocation5], 0  ;;  %s955_s0 = inlined_call_operand.hbm [shape: bf16[32,128], index: 0, kind: input, shape index: {}]   ;;  %s956_s1 = inlined_call_operand.hbm [shape: bf16[1,128,512], index: 1, kind: input, shape index: {}]   ;;  %s957_s2 = inlined_call_operand.vmem [shape: f32[1,512], index: 2, kind: input, shape index: {}]   ;;  %s958_s3 = inlined_call_operand.vmem [shape: f32[1,512], index: 3, kind: input, shape index: {}]   ;;  %s959_s4 = inlined_call_operand.<no memory space> [shape: f32[1,1], index: 4, kind: input, shape index: {}]   ;;  %s960_s5 = inlined_call_operand.hbm [shape: f32[4,3], index: 5, kind: output, shape index: {}]  }
   0x1   :  { %12 = vsyncpa [#allocation8], 0 }
   0x2   :  { %13 = vsyncpa [#allocation6], 0  ;;  %s837_s18 = smov [#allocation4]   ;;  %s765_s22 = scalar_lea.hbm %s955_s0, 256 }
   0x3   :  { %s19_s19 = sshll.u32 %s837_s18, 4  ;;  %p766_p0 = scmp.ne.s32.totalorder %s955_s0, %s765_s22  ;;  %s20_s19 = int_to_ptr.vmem [resolvable:$true] %s19_s19 }
   0x4   :  { %p769_p1 = scmp.lt.u32.totalorder %s765_s22, %s955_s0 }
   0x6   :  { %p771_p2 = pnand %p769_p1, %p766_p0 }
   0x8   :  { %774 = shalt.err (!%p771_p2)
}
   0x9   :  { %s775_s4 = scalar_lea.vmem %s20_s19, 256  ;;  %p780_p4 = scmp.lt.s32.totalorder %s20_s19, %s20_s19 }
   0xa   :  { %p776_p3 = scmp.ne.s32.totalorder %s20_s19, %s775_s4  ;;  %p781_p5 = scmp.lt.s32.totalorder %s775_s4, %s775_s4 }
   0xc   :  { %p782_p6 = por %p781_p5, %p780_p4 }
   0xe   :  { %p783_p7 = pnand %p782_p6, %p776_p3 }
  0x10   :  { %786 = shalt.err (!%p783_p7)
}
  0x11   :  { %s838_s26 = smov 64   ;;  %s839_s27 = smov 4  }
  0x12   :  { %25 = dma.hbm_to_vmem [thread:$0]  %s955_s0, 256, %s20_s19, [#allocation5], %s838_s26, %s838_s26, %s839_s27  }
  0x13   :  { %s840_s30 = smov [#allocation7]   ;;  %s787_s9 = scalar_lea.hbm %s956_s1, 4096 }
  0x14   :  { %s31_s6 = sshll.u32 %s840_s30, 4  ;;  %p788_p8 = scmp.ne.s32.totalorder %s956_s1, %s787_s9  ;;  %s32_s6 = int_to_ptr.vmem [resolvable:$true] %s31_s6 }
  0x15   :  { %p791_p9 = scmp.lt.u32.totalorder %s787_s9, %s956_s1 }
  0x17   :  { %p793_p10 = pnand %p791_p9, %p788_p8 }
  0x19   :  { %796 = shalt.err (!%p793_p10)
}
  0x1a   :  { %s797_s14 = scalar_lea.vmem %s32_s6, 4096  ;;  %p802_p12 = scmp.lt.s32.totalorder %s32_s6, %s32_s6 }
  0x1b   :  { %p798_p11 = scmp.ne.s32.totalorder %s32_s6, %s797_s14  ;;  %p803_p13 = scmp.lt.s32.totalorder %s797_s14, %s797_s14 }
  0x1d   :  { %p804_p0 = por %p803_p13, %p802_p12 }
  0x1f   :  { %p805_p1 = pnand %p804_p0, %p798_p11 }
  0x21   :  { %808 = shalt.err (!%p805_p1)
}
  0x22   :  { %s841_s0 = smov 256   ;;  %s842_s15 = smov 16  }
  0x23   :  { %37 = dma.hbm_to_vmem [thread:$0]  %s956_s1, 4096, %s32_s6, [#allocation8], %s841_s0, %s841_s0, %s842_s15  }
  0x24   :  { %831 = dma.done.wait [#allocation5], 256  }
  0x25   :  { %832 = vsyncadd [#allocation5], 4294967040 }
  0x26   :  { %833 = dma.done.wait [#allocation8], 4096  }
  0x27   :  { %834 = vsyncadd [#allocation8], 4294963200  ;;  %v843_v0 = vmov 0   ;;  %v711_v1 = vld [vmem:[#allocation7 + $0x4] ss:$16 sps:$4 sm:$0xff]   ;;  %v760_v34 = vld [vmem:[#allocation4 + $0x8] sm:$0xff]   ;;  %v446_v35 = vlaneseq }
  0x28   :  { %327 = vmatprep.mubr.bf16.mxu0 %v843_v0  ;;  %380 = vmatprep.mubr.bf16.mxu1 %v843_v0  ;;  %v713_v2 = vld [vmem:[#allocation7 + $0xc] ss:$16 sps:$4 sm:$0xff]   ;;  %v715_v3 = vld [vmem:[#allocation7] ss:$16 sps:$4 sm:$0xff]   ;;  %v716_v4 = vld [vmem:[#allocation7 + $0x8] ss:$16 sps:$4 sm:$0xff]  }
  0x29   :  { %295 = vmatprep.subr.bf16.mxu0 %v711_v1  ;;  %348 = vmatprep.subr.bf16.mxu1 %v713_v2  ;;  %v717_v5 = vld [vmem:[#allocation7 + $0x24] ss:$16 sps:$4 sm:$0xff]   ;;  %v719_v6 = vld [vmem:[#allocation7 + $0x2c] ss:$16 sps:$4 sm:$0xff]   ;;  %v721_v7 = vld [vmem:[#allocation7 + $0x20] ss:$16 sps:$4 sm:$0xff]  }
  0x2a   :  { %296 = vmatpush1.bf16.msra.mxu0 %v715_v3  ;;  %349 = vmatpush1.bf16.msra.mxu1 %v716_v4  ;;  %v722_v8 = vld [vmem:[#allocation7 + $0x28] ss:$16 sps:$4 sm:$0xff]   ;;  %v723_v9 = vld [vmem:[#allocation7 + $0x44] ss:$16 sps:$4 sm:$0xff]   ;;  %v725_v10 = vld [vmem:[#allocation7 + $0x4c] ss:$16 sps:$4 sm:$0xff]  }
  0x2b   :  { %297 = vmatprep.subr.bf16.mxu0 %v717_v5  ;;  %350 = vmatprep.subr.bf16.mxu1 %v719_v6  ;;  %v727_v11 = vld [vmem:[#allocation7 + $0x40] ss:$16 sps:$4 sm:$0xff]   ;;  %v728_v12 = vld [vmem:[#allocation7 + $0x48] ss:$16 sps:$4 sm:$0xff]   ;;  %v729_v13 = vld [vmem:[#allocation7 + $0x64] ss:$16 sps:$4 sm:$0xff]  }
  0x2c   :  { %v731_v14 = vld [vmem:[#allocation7 + $0x6c] ss:$16 sps:$4 sm:$0xff]   ;;  %v733_v15 = vld [vmem:[#allocation7 + $0x60] ss:$16 sps:$4 sm:$0xff]   ;;  %v734_v16 = vld [vmem:[#allocation7 + $0x68] ss:$16 sps:$4 sm:$0xff]  }
  0x2d   :  { %v735_v17 = vld [vmem:[#allocation7 + $0x84] ss:$16 sps:$4 sm:$0xff]   ;;  %v737_v18 = vld [vmem:[#allocation7 + $0x8c] ss:$16 sps:$4 sm:$0xff]   ;;  %v739_v19 = vld [vmem:[#allocation7 + $0x80] ss:$16 sps:$4 sm:$0xff]  }
  0x2e   :  { %298 = vmatpush1.bf16.msra.mxu0 %v721_v7  ;;  %351 = vmatpush1.bf16.msra.mxu1 %v722_v8  ;;  %v740_v20 = vld [vmem:[#allocation7 + $0x88] ss:$16 sps:$4 sm:$0xff]   ;;  %v741_v21 = vld [vmem:[#allocation7 + $0xa4] ss:$16 sps:$4 sm:$0xff]   ;;  %v743_v22 = vld [vmem:[#allocation7 + $0xac] ss:$16 sps:$4 sm:$0xff]  }
  0x2f   :  { %299 = vmatprep.subr.bf16.mxu0 %v723_v9  ;;  %352 = vmatprep.subr.bf16.mxu1 %v725_v10  ;;  %v745_v23 = vld [vmem:[#allocation7 + $0xa0] ss:$16 sps:$4 sm:$0xff]   ;;  %v746_v24 = vld [vmem:[#allocation7 + $0xa8] ss:$16 sps:$4 sm:$0xff]   ;;  %v747_v25 = vld [vmem:[#allocation7 + $0xc4] ss:$16 sps:$4 sm:$0xff]  }
  0x30   :  { %v749_v26 = vld [vmem:[#allocation7 + $0xcc] ss:$16 sps:$4 sm:$0xff]   ;;  %v751_v27 = vld [vmem:[#allocation7 + $0xc0] ss:$16 sps:$4 sm:$0xff]   ;;  %v752_v28 = vld [vmem:[#allocation7 + $0xc8] ss:$16 sps:$4 sm:$0xff]  }
  0x31   :  { %v753_v29 = vld [vmem:[#allocation7 + $0xe4] ss:$16 sps:$4 sm:$0xff]   ;;  %v755_v30 = vld [vmem:[#allocation7 + $0xec] ss:$16 sps:$4 sm:$0xff]   ;;  %v757_v31 = vld [vmem:[#allocation7 + $0xe0] ss:$16 sps:$4 sm:$0xff]  }
  0x32   :  { %300 = vmatpush1.bf16.msra.mxu0 %v727_v11  ;;  %353 = vmatpush1.bf16.msra.mxu1 %v728_v12  ;;  %v758_v32 = vld [vmem:[#allocation7 + $0xe8] ss:$16 sps:$4 sm:$0xff]   ;;  %v759_v33 = vld [vmem:[#allocation4] sm:$0xff]   ;;  %v447_v36 = vshrl.u32 %v446_v35, 7  ;;  %vm474_vm0 = vcmask 1041408   ;;  %vm631_vm1 = vcmask 7168  }
  0x33   :  { %301 = vmatprep.subr.bf16.mxu0 %v729_v13  ;;  %354 = vmatprep.subr.bf16.mxu1 %v731_v14  ;;  %v444_v43 = vld [vmem:[%s957_s2] sm:$0xf]  ;;  %vm633_vm2 = vcmask 15360   ;;  %vm637_vm3 = vcmask 23552   ;;  %s844_s2 = smov [#allocation9]   ;;  %vm651_vm4 = vcmask 19456  }
  0x34   :  { %v448_v39 = vsub.s32 0, %v447_v36  ;;  %v456_v40 = vsub.s32 2, %v447_v36  ;;  %v452_v44 = vsub.s32 1, %v447_v36  ;;  %v460_v45 = vsub.s32 3, %v447_v36  ;;  %s659_s19 = sshll.u32 %s844_s2, 4  ;;  %s660_s19 = int_to_ptr.vmem [resolvable:$true] %s659_s19 }
  0x35   :  { %s809_s20 = scalar_lea.vmem %s660_s19, 64  ;;  %p814_p3 = scmp.lt.s32.totalorder %s660_s19, %s660_s19 }
  0x36   :  { %302 = vmatpush1.bf16.msra.mxu0 %v733_v15  ;;  %355 = vmatpush1.bf16.msra.mxu1 %v734_v16  ;;  %v449_v50 = vrot.slane %v444_v43, %v448_v39  ;;  %v457_v51 = vrot.slane %v444_v43, %v456_v40  ;;  %v453_v52 = vrot.slane %v444_v43, %v452_v44  ;;  %p810_p2 = scmp.ne.s32.totalorder %s660_s19, %s809_s20  ;;  %p815_p4 = scmp.lt.s32.totalorder %s809_s20, %s809_s20 }
  0x37   :  { %303 = vmatprep.subr.bf16.mxu0 %v735_v17  ;;  %356 = vmatprep.subr.bf16.mxu1 %v737_v18  ;;  %v461_v53 = vrot.slane %v444_v43, %v460_v45 }
  0x38   :  { %p816_p5 = por %p815_p4, %p814_p3 }
  0x3a   :  { %304 = vmatpush1.bf16.msra.mxu0 %v739_v19  ;;  %357 = vmatpush1.bf16.msra.mxu1 %v740_v20  ;;  %p817_p6 = pnand %p816_p5, %p810_p2 }
  0x3b   :  { %305 = vmatprep.subr.bf16.mxu0 %v741_v21  ;;  %358 = vmatprep.subr.bf16.mxu1 %v743_v22 }
  0x3e   :  { %306 = vmatpush1.bf16.msra.mxu0 %v745_v23  ;;  %359 = vmatpush1.bf16.msra.mxu1 %v746_v24 }
  0x3f   :  { %307 = vmatprep.subr.bf16.mxu0 %v747_v25  ;;  %360 = vmatprep.subr.bf16.mxu1 %v749_v26 }
  0x42   :  { %308 = vmatpush1.bf16.msra.mxu0 %v751_v27  ;;  %361 = vmatpush1.bf16.msra.mxu1 %v752_v28 }
  0x43   :  { %309 = vmatprep.subr.bf16.mxu0 %v753_v29  ;;  %362 = vmatprep.subr.bf16.mxu1 %v755_v30 }
  0x46   :  { %310 = vmatpush1.bf16.msra.mxu0 %v757_v31  ;;  %363 = vmatpush1.bf16.msra.mxu1 %v758_v32 }
  0x49   :  { %328 = vmatmul.mubr.bf16.vlgmr.msra.gmra.mrb[0].mxu0 %v759_v33  ;;  %381 = vmatmul.mubr.bf16.vlgmr.msra.gmra.mrb[0].mxu1 %v759_v33 }
  0x4a   :  { %337 = vmatprep.mubr.bf16.mxu0 %v843_v0  ;;  %390 = vmatprep.mubr.bf16.mxu1 %v843_v0 }
  0x51   :  { %338 = vmatmul.mubr.bf16.gmra.mrb[4].mxu0 %v760_v34  ;;  %391 = vmatmul.mubr.bf16.gmra.mrb[4].mxu1 %v760_v34 }
 0x11c   :  { %v329_v37 = vpop.f32.mrb[0].mxu0  ;;  %v382_v38 = vpop.f32.mrb[0].mxu1 }
 0x11d   :  { %v331_v41 = vpop.f32.mrb[1].mxu0  ;;  %v384_v42 = vpop.f32.mrb[1].mxu1  ;;  %v906_v56 = vadd.f32 %v449_v50, %v329_v37  ;;  %v908_v57 = vadd.f32 %v457_v51, %v382_v38 }
 0x11e   :  { %v333_v46 = vpop.f32.mrb[2].mxu0  ;;  %v386_v47 = vpop.f32.mrb[2].mxu1  ;;  %v910_v62 = vadd.f32 %v453_v52, %v331_v41  ;;  %v912_v63 = vadd.f32 %v461_v53, %v384_v42 }
 0x11f   :  { %v335_v48 = vpop.f32.mrb[3].mxu0  ;;  %v388_v49 = vpop.f32.mrb[3].mxu1 }
 0x124   :  { %v339_v54 = vpop.f32.mrb[4].mxu0  ;;  %v392_v55 = vpop.f32.mrb[4].mxu1 }
 0x125   :  { %v470_v58 = vadd.f32 %v449_v50, %v339_v54  ;;  %v472_v59 = vadd.f32 %v457_v51, %v392_v55  ;;  %v341_v60 = vpop.f32.mrb[5].mxu0  ;;  %v394_v61 = vpop.f32.mrb[5].mxu1 }
 0x126   :  { %v471_v0 = vadd.f32 %v453_v52, %v341_v60  ;;  %v914_v1 = vadd.f32 %v461_v53, %v394_v61  ;;  %v343_v2 = vpop.f32.mrb[6].mxu0  ;;  %v396_v3 = vpop.f32.mrb[6].mxu1 }
 0x127   :  { %v475_v4 = vsel %vm474_vm0, %v470_v58, 0.0  ;;  %v512_v5 = vrot.slane %v470_v58, 2  ;;  %v552_v6 = vrot.slane %v470_v58, 4  ;;  %v489_v7 = vsel %vm474_vm0, %v472_v59, 0.0  ;;  %v345_v8 = vpop.f32.mrb[7].mxu0  ;;  %v398_v9 = vpop.f32.mrb[7].mxu1 }
 0x128   :  { %v476_v10 = vrot.slane %v475_v4, 4  ;;  %v490_v11 = vrot.slane %v489_v7, 4  ;;  %v514_v12 = vrot.slane %v472_v59, 2  ;;  %v554_v13 = vrot.slane %v472_v59, 4 }
 0x129   :  { %v520_v14 = vsel %vm474_vm0, %v512_v5, 0.0  ;;  %v560_v15 = vsel %vm474_vm0, %v552_v6, 0.0  ;;  %v482_v16 = vsel %vm474_vm0, %v471_v0, 0.0  ;;  %v513_v17 = vrot.slane %v471_v0, 2 }
 0x12a   :  { %v477_v18 = vadd.f32 %v476_v10, %v475_v4  ;;  %v521_v19 = vrot.slane %v520_v14, 4  ;;  %v561_v20 = vrot.slane %v560_v15, 4  ;;  %v491_v21 = vadd.f32 %v490_v11, %v489_v7 }
 0x12b   :  { %v534_v22 = vsel %vm474_vm0, %v514_v12, 0.0  ;;  %v574_v23 = vsel %vm474_vm0, %v554_v13, 0.0  ;;  %v483_v24 = vrot.slane %v482_v16, 4  ;;  %v527_v25 = vsel %vm474_vm0, %v513_v17, 0.0 }
 0x12c   :  { %v478_v26 = vrot.slane %v477_v18, 2  ;;  %v522_v27 = vadd.f32 %v521_v19, %v520_v14  ;;  %v562_v28 = vadd.f32 %v561_v20, %v560_v15  ;;  %v492_v29 = vrot.slane %v491_v21, 2 }
 0x12d   :  { %v535_v30 = vrot.slane %v534_v22, 4  ;;  %v575_v31 = vrot.slane %v574_v23, 4  ;;  %v484_v32 = vadd.f32 %v483_v24, %v482_v16  ;;  %v528_v33 = vrot.slane %v527_v25, 4 }
 0x12e   :  { %v479_v34 = vadd.f32 %v478_v26, %v477_v18  ;;  %v523_v35 = vrot.slane %v522_v27, 2  ;;  %v563_v36 = vrot.slane %v562_v28, 2  ;;  %v493_v37 = vadd.f32 %v492_v29, %v491_v21 }
 0x12f   :  { %v536_v38 = vadd.f32 %v535_v30, %v534_v22  ;;  %v576_v39 = vadd.f32 %v575_v31, %v574_v23  ;;  %v485_v40 = vrot.slane %v484_v32, 2  ;;  %v529_v41 = vadd.f32 %v528_v33, %v527_v25 }
 0x130   :  { %v480_v42 = vrot.slane %v479_v34, 1  ;;  %v524_v43 = vadd.f32 %v523_v35, %v522_v27  ;;  %v564_v44 = vadd.f32 %v563_v36, %v562_v28  ;;  %v553_v45 = vrot.slane %v471_v0, 4 }
 0x131   :  { %v537_v46 = vrot.slane %v536_v38, 2  ;;  %v577_v47 = vrot.slane %v576_v39, 2  ;;  %v486_v48 = vadd.f32 %v485_v40, %v484_v32  ;;  %v530_v49 = vrot.slane %v529_v41, 2 }
 0x132   :  { %v525_v50 = vrot.slane %v524_v43, 1  ;;  %v567_v51 = vsel %vm474_vm0, %v553_v45, 0.0  ;;  %v496_v52 = vsel %vm474_vm0, %v914_v1, 0.0  ;;  %v515_v53 = vrot.slane %v914_v1, 2 }
 0x133   :  { %v538_v54 = vadd.f32 %v537_v46, %v536_v38  ;;  %v487_v55 = vrot.slane %v486_v48, 1  ;;  %v531_v58 = vadd.f32 %v530_v49, %v529_v41  ;;  %v568_v59 = vrot.slane %v567_v51, 4 }
 0x134   :  { %v497_v60 = vrot.slane %v496_v52, 4  ;;  %v541_v61 = vsel %vm474_vm0, %v515_v53, 0.0  ;;  %v555_v0 = vrot.slane %v914_v1, 4  ;;  %v481_v2 = vadd.f32 %v480_v42, %v479_v34 }
 0x135   :  { %v532_v3 = vrot.slane %v531_v58, 1  ;;  %v569_v4 = vadd.f32 %v568_v59, %v567_v51  ;;  %v542_v5 = vrot.slane %v541_v61, 4  ;;  %v488_v6 = vadd.f32 %v487_v55, %v486_v48 }
 0x136   :  { %v498_v7 = vadd.f32 %v497_v60, %v496_v52  ;;  %v581_v8 = vsel %vm474_vm0, %v555_v0, 0.0  ;;  %v494_v9 = vrot.slane %v493_v37, 1  ;;  %v504_v10 = vmul.f32 0.5, %v481_v2 }
 0x137   :  { %v570_v11 = vrot.slane %v569_v4, 2  ;;  %v543_v12 = vadd.f32 %v542_v5, %v541_v61  ;;  %v582_v13 = vrot.slane %v581_v8, 4  ;;  %v505_v14 = vmul.f32 0.5, %v488_v6 }
 0x138   :  { %v499_v15 = vrot.slane %v498_v7, 2  ;;  %v495_v16 = vadd.f32 %v494_v9, %v493_v37  ;;  %v592_v17 = vsub.f32 %v906_v56, %v504_v10  ;;  %v565_v18 = vrot.slane %v564_v44, 1 }
 0x139   :  { %v571_v1 = vadd.f32 %v570_v11, %v569_v4  ;;  %v544_v19 = vrot.slane %v543_v12, 2  ;;  %v583_v20 = vadd.f32 %v582_v13, %v581_v8  ;;  %v593_v21 = vsub.f32 %v910_v62, %v505_v14 }
 0x13a   :  { %v500_v22 = vadd.f32 %v499_v15, %v498_v7  ;;  %v506_v23 = vmul.f32 0.5, %v495_v16  ;;  %v596_v24 = vmul.f32 %v592_v17, %v592_v17  ;;  %v566_v25 = vadd.f32 %v565_v18, %v564_v44 }
 0x13b   :  { %v597_v26 = vmul.f32 %v593_v21, %v593_v21  ;;  %v572_v27 = vrot.slane %v571_v1, 1  ;;  %v578_v28 = vadd.f32 %v577_v47, %v576_v39  ;;  %v584_v29 = vrot.slane %v583_v20, 2 }
 0x13c   :  { %v501_v30 = vrot.slane %v500_v22, 1  ;;  %v594_v31 = vsub.f32 %v908_v57, %v506_v23  ;;  %v588_v32 = vmul.f32 0.5, %v566_v25  ;;  %v526_v33 = vadd.f32 %v525_v50, %v524_v43 }
 0x13d   :  { %v616_v34 = vadd.f32 %v597_v26, %v596_v24  ;;  %v573_v35 = vadd.f32 %v572_v27, %v571_v1  ;;  %v579_v36 = vrot.slane %v578_v28, 1  ;;  %v585_v37 = vadd.f32 %v584_v29, %v583_v20 }
 0x13e   :  { %v502_v38 = vadd.f32 %v501_v30, %v500_v22  ;;  %v598_v40 = vmul.f32 %v594_v31, %v594_v31  ;;  %v608_v41 = vsub.f32 %v906_v56, %v588_v32  ;;  %v533_v42 = vadd.f32 %v532_v3, %v531_v58 }
 0x13f   :  { %v580_v45 = vadd.f32 %v579_v36, %v578_v28  ;;  %v586_v44 = vrot.slane %v585_v37, 1  ;;  %v589_v46 = vmul.f32 0.5, %v573_v35  ;;  %v539_v48 = vrot.slane %v538_v54, 1 }
 0x140   :  { %v507_v39 = vmul.f32 0.5, %v502_v38  ;;  %v617_v47 = vadd.f32 %v616_v34, %v598_v40  ;;  %v612_v49 = vmul.f32 %v608_v41, %v608_v41  ;;  %v545_v51 = vadd.f32 %v544_v19, %v543_v12 }
 0x141   :  { %v587_v52 = vadd.f32 %v586_v44, %v585_v37  ;;  %v590_v53 = vmul.f32 0.5, %v580_v45  ;;  %v609_v43 = vsub.f32 %v910_v62, %v589_v46  ;;  %v540_v50 = vadd.f32 %v539_v48, %v538_v54 }
 0x142   :  { %v595_v55 = vsub.f32 %v912_v63, %v507_v39  ;;  %v546_v59 = vrot.slane %v545_v51, 1  ;;  %v548_v60 = vmul.f32 0.5, %v526_v33  ;;  %v549_v61 = vmul.f32 0.5, %v533_v42 }
 0x143   :  { %v591_v0 = vmul.f32 0.5, %v587_v52  ;;  %v610_v58 = vsub.f32 %v908_v57, %v590_v53  ;;  %v613_v2 = vmul.f32 %v609_v43, %v609_v43  ;;  %v550_v3 = vmul.f32 0.5, %v540_v50 }
 0x144   :  { %v599_v4 = vmul.f32 %v595_v55, %v595_v55  ;;  %v547_v5 = vadd.f32 %v546_v59, %v545_v51  ;;  %v600_v6 = vsub.f32 %v906_v56, %v548_v60  ;;  %v601_v7 = vsub.f32 %v910_v62, %v549_v61 }
 0x145   :  { %v611_v8 = vsub.f32 %v912_v63, %v591_v0  ;;  %v614_v9 = vmul.f32 %v610_v58, %v610_v58  ;;  %v626_v54 = vadd.f32 %v613_v2, %v612_v49  ;;  %v602_v10 = vsub.f32 %v908_v57, %v550_v3 }
 0x146   :  { %v618_v11 = vadd.f32 %v617_v47, %v599_v4  ;;  %v551_v12 = vmul.f32 0.5, %v547_v5  ;;  %v604_v13 = vmul.f32 %v600_v6, %v600_v6  ;;  %v605_v14 = vmul.f32 %v601_v7, %v601_v7 }
 0x147   :  { %v615_v15 = vmul.f32 %v611_v8, %v611_v8  ;;  %v627_v16 = vadd.f32 %v626_v54, %v614_v9  ;;  %v606_v18 = vmul.f32 %v602_v10, %v602_v10 }
 0x148   :  { %619 = vadd.xlane.f32.xlu0 %v618_v11  ;;  %v603_v17 = vsub.f32 %v912_v63, %v551_v12  ;;  %v621_v1 = vadd.f32 %v605_v14, %v604_v13 }
 0x149   :  { %v628_v56 = vadd.f32 %v627_v16, %v615_v15 }
 0x14a   :  { %v607_v19 = vmul.f32 %v603_v17, %v603_v17  ;;  %v622_v62 = vadd.f32 %v621_v1, %v606_v18 }
 0x14b   :  { %629 = vadd.xlane.f32.xlu1 %v628_v56 }
 0x14c   :  { %v623_v20 = vadd.f32 %v622_v62, %v607_v19 }
 0x14e   :  { %624 = vadd.xlane.f32.xlu0 %v623_v20 }
 0x1d5   :  { %v620_v21 = vpop.xlane.xlu0 %619 }
 0x1d8   :  { %v630_v22 = vpop.xlane.xlu1 %629 }
 0x1db   :  { %v625_v57 = vpop.xlane.xlu0 %624 }
 0x1dc   :  { %v632_v23 = vsel %vm631_vm1, %v620_v21, %v625_v57 }
 0x1dd   :  { %v634_v24 = vsel %vm633_vm2, %v632_v23, %v630_v22 }
 0x1de   :  { %v635_v25 = vsub.f32 0.0, %v634_v24 }
 0x1e0   :  { %v636_v26 = vadd.f32 1e-08, %v635_v25 }
 0x1e2   :  { %v638_v27 = vsel %vm637_vm3, %v636_v26, -inf }
 0x1e3   :  { %639 = vmax.xlane.f32.xlu1 %v638_v27 }
 0x270   :  { %v640_v63 = vpop.xlane.xlu1 %639 }
 0x271   :  { %v641_v28 = vsub.f32 %v636_v26, %v640_v63 }
 0x273   :  { %v642_v29 = vmul.f32 1.442695, %v641_v28 }
 0x275   :  { %761 = vpow2.f32 %v642_v29 }
 0x27f   :  { %v762_v30 = vpop.eup %761 }
 0x280   :  { %v644_v31 = vsel %vm637_vm3, %v762_v30, 0.0 }
 0x281   :  { %645 = vadd.xlane.f32.xlu0 %v644_v31 }
 0x30e   :  { %v646_v32 = vpop.xlane.xlu0 %645 }
 0x30f   :  { %763 = vlog2.f32 %v646_v32 }
 0x319   :  { %v764_v33 = vpop.eup %763 }
 0x31a   :  { %v648_v34 = vmul.f32 0.6931472, %v764_v33 }
 0x31c   :  { %v649_v35 = vadd.f32 %v648_v34, %v640_v63 }
 0x31e   :  { %v650_v36 = vsub.f32 %v636_v26, %v649_v35 }
 0x320   :  { %652 = vst.msk [vmem:[#allocation9] sm:$0xf] %vm651_vm4, %v650_v36 }
 0x321   :  { %820 = shalt.err (!%p817_p6)
}
 0x322   :  { %s821_s23 = scalar_lea.hbm %s960_s5, 64 }
 0x323   :  { %p822_p7 = scmp.ne.s32.totalorder %s960_s5, %s821_s23  ;;  %p825_p8 = scmp.lt.u32.totalorder %s821_s23, %s960_s5 }
 0x325   :  { %p827_p9 = pnand %p825_p8, %p822_p7 }
 0x327   :  { %830 = shalt.err (!%p827_p9)
}
 0x328   :  { %662 = dma.vmem_to_hbm [thread:$0]  %s660_s19, 64, %s960_s5, [#allocation6]  }
 0x329   :  { %835 = dma.done.wait [#allocation6], 64  }
 0x32a   :  { %836 = vsyncadd [#allocation6], 4294967232 }
 0x32b   :  { %666 = vsyncpa [#allocation5], 1 }
 0x32c   :  { %667 = vsyncpa [#allocation8], 1 }
 0x32d   :  { %668 = vsyncpa [#allocation6], 1 }

</bundles_post_ra>
